<compile_context>
chip_gen: v6e
topology: v6e:2x2x1
jax: 0.10.0
libtpu: 0.0.40
codegen_flags: <defaults>
</compile_context>

<pallas_src>
import math

import jax
import jax.numpy as jnp
from jax.experimental import pallas as pl
from jax.experimental.pallas import tpu as pltpu


# --------------------------------------------------------------------------- #
# Kernel
# --------------------------------------------------------------------------- #
def _context_gating_kernel(x_ref, w_ref, shift_ref, o_ref):
    """out = x * sigmoid(x @ W' + shift), with W' = W * bn_scale (pre-folded).

    x_ref/o_ref: (TM, D) bf16 streamed tiles; w_ref: (D, D) bf16 (resident);
    shift_ref: (1, D) f32. Matmul on MXU with f32 accumulation; epilogue f32.
    """
    x_bf16 = x_ref[...]                                        # (TM, D) bf16
    # MXU matmul: bf16 operands, f32 accumulation.
    xw = jnp.dot(x_bf16, w_ref[...],
                 preferred_element_type=jnp.float32)           # (TM, D) f32
    z = xw + shift_ref[...]                                    # VPU, f32
    # sigmoid(z) = 1 / (1 + exp(-z)): exp on EUP, reciprocal on the EUP
    # approx path (cheap); stays exact-enough vs the bf16 output rounding.
    gates = pl.reciprocal(1.0 + jnp.exp(-z), approx=True)      # f32
    o_ref[...] = (x_bf16.astype(jnp.float32) * gates).astype(o_ref.dtype)


# --------------------------------------------------------------------------- #
# Wrapper
# --------------------------------------------------------------------------- #
def _vmem_capacity_bytes():
    """Per-generation VMEM capacity (128 MiB v5e/v6e, 64 MiB v7x per TC)."""
    try:
        cap = getattr(pltpu.get_tpu_info(), "vmem_capacity_bytes", None)
        if cap:
            return int(cap)
    except Exception:
        pass
    return 64 << 20  # conservative fallback (v7x per-TensorCore)


def _choose_batch_tile(B, block_rows):
    """Batch tile: multiple of 16 (bf16 sublane packing; 256 for big tiles),
    >= 2 grid steps when B allows (v7x megacore sharding), and preferring a
    divisor of B so the final tile is not ragged (no masked partial stores)."""
    if B <= 16:
        return B
    tm = min(block_rows, pl.cdiv(B, 2))          # at least 2 grid steps
    align = 256 if tm >= 256 else 16
    tm = max(16, (tm // align) * align)
    for cand in range(tm, align - 1, -align):    # prefer tm that divides B
        if B % cand == 0:
            return cand
    return tm


def context_gating_pallas(x, gating_weights, shift, *, block_rows=1024):
    """Fused context gating: x * sigmoid(x @ W' + shift).

    x:               (B, D) bfloat16  pooled activations (streamed, bf16 I/O)
    gating_weights:  (D, D) bfloat16  gating weights with BN scale folded in
    shift:           (1, D) float32   folded BN shift (or plain bias)
    returns          (B, D) bfloat16
    """
    B, D = x.shape
    assert gating_weights.shape == (D, D)
    assert shift.shape == (1, D)
    assert D % 128 == 0, "output_dim should be lane-aligned (multiple of 128)"
    assert x.dtype == jnp.bfloat16, "pass pooled activations as bfloat16"
    assert gating_weights.dtype == jnp.bfloat16

    tm = _choose_batch_tile(B, block_rows)
    grid = (pl.cdiv(B, tm),)

    # VMEM working set: W' single-buffered (Buffered(1), grid-invariant),
    # shift single-buffered, x/out tiles double-buffered (default pipeline).
    w_bytes = D * D * 2                       # bf16, single-buffered
    shift_bytes = D * 4
    tile_bytes = tm * D * 2                   # bf16 tile
    needed = w_bytes + shift_bytes + 4 * tile_bytes
    vmem_budget = _vmem_capacity_bytes() - (8 << 20)   # headroom for Mosaic
    if needed > vmem_budget:
        raise ValueError(
            f"context_gating working set {needed >> 20} MiB exceeds VMEM "
            f"budget {vmem_budget >> 20} MiB (output_dim={D}, tm={tm}); "
            f"reduce block_rows or add K/N tiling of W (TODO(synk)).")
    vmem_limit = int(min(max(needed + (4 << 20), 32 << 20), vmem_budget))

    return pl.pallas_call(
        _context_gating_kernel,
        out_shape=jax.ShapeDtypeStruct((B, D), jnp.bfloat16),
        grid_spec=pltpu.PrefetchScalarGridSpec(
            num_scalar_prefetch=0,
            grid=grid,
            in_specs=[
                # x: streamed, default double-buffered pipeline.
                pl.BlockSpec((tm, D), lambda i: (i, 0)),
                # W': grid-invariant -> single VMEM buffer, one DMA total.
                pl.BlockSpec((D, D), lambda i: (0, 0),
                             pipeline_mode=pl.Buffered(1)),
                # shift: grid-invariant.
                pl.BlockSpec((1, D), lambda i: (0, 0),
                             pipeline_mode=pl.Buffered(1)),
            ],
            out_specs=pl.BlockSpec((tm, D), lambda i: (i, 0)),
        ),
        compiler_params=pltpu.CompilerParams(
            # Batch tiles are independent -> megacore-shardable on v7x.
            dimension_semantics=("parallel",),
            vmem_limit_bytes=vmem_limit,
        ),
    )(x, gating_weights, shift)


# --------------------------------------------------------------------------- #
# Module
# --------------------------------------------------------------------------- #
class PoolingBaseModel:
    """JAX/Pallas port of the LOUPE PoolingBaseModel.

    Holds the pooling hyper-parameters and provides the context-gating block
    on pooled activations of shape (batch, output_dim).
    """

    def __init__(self, feature_size, max_samples, cluster_size, output_dim,
                 gating=True, add_batch_norm=True, is_training=True,
                 key=None):
        if key is None:
            key = jax.random.PRNGKey(0)
        self.feature_size = feature_size
        self.max_samples = max_samples
        self.output_dim = output_dim
        # TODO(synk): is_training batch-statistics path not implemented; BN is
        # folded in inference form (running_mean / running_var) regardless.
        self.is_training = is_training
        self.gating = gating
        self.add_batch_norm = add_batch_norm
        self.cluster_size = cluster_size

        D = output_dim
        k_w, k_g, k_b, k_m, k_v, k_bias = jax.random.split(key, 6)
        # Gating weights ~ N(0, 1/sqrt(D)) as in LOUPE.
        w = jax.random.normal(k_w, (D, D), jnp.float32) / math.sqrt(D)
        if add_batch_norm:
            gamma = 1.0 + 0.1 * jax.random.normal(k_g, (D,), jnp.float32)
            beta = 0.1 * jax.random.normal(k_b, (D,), jnp.float32)
            running_mean = 0.1 * jax.random.normal(k_m, (D,), jnp.float32)
            running_var = jnp.abs(
                1.0 + 0.1 * jax.random.normal(k_v, (D,), jnp.float32))
            eps = 1e-5
            # Fold inference-mode batch norm into per-feature scale/shift.
            scale = gamma / jnp.sqrt(running_var + eps)
            shift = beta - running_mean * scale
        else:
            # Plain bias path: gates = sigmoid(x @ W + b).
            bias = (jax.random.normal(k_bias, (D,), jnp.float32)
                    / math.sqrt(D))
            scale = jnp.ones((D,), jnp.float32)
            shift = bias

        # Fold the BN scale into the gating weights (column-wise) and store
        # them in bf16 for the MXU; keep an f32 copy for reference checks.
        w_folded = w * scale[None, :]
        self.gating_weights_f32 = w_folded
        self.gating_weights = w_folded.astype(jnp.bfloat16)
        self.gating_shift = shift.reshape(1, D).astype(jnp.float32)

    def context_gating(self, input_layer, *, block_rows=1024):
        # Streamed operands are bf16 end-to-end (HBM-bandwidth-bound regime);
        # cast here only if the caller handed us f32.
        x = input_layer
        if x.dtype != jnp.bfloat16:
            x = x.astype(jnp.bfloat16)
        return context_gating_pallas(
            x, self.gating_weights, self.gating_shift, block_rows=block_rows)

    def forward(self, reshaped_input, *, block_rows=1024):
        # Abstract in the original; the base class' own compute block
        # (context gating on pooled activations) is run here.
        if not self.gating:
            return reshaped_input
        return self.context_gating(reshaped_input, block_rows=block_rows)

    def __call__(self, reshaped_input, **kw):
        return self.forward(reshaped_input, **kw)


# --------------------------------------------------------------------------- #
# References (match kernel math) + self-test
# --------------------------------------------------------------------------- #
def _reference_bf16(x_bf16, w_bf16, shift):
    """Matches the kernel math (bf16 operands, f32 acc, bf16 output)."""
    xw = jnp.dot(x_bf16, w_bf16, preferred_element_type=jnp.float32)
    gates = jax.nn.sigmoid(xw + shift)
    return (x_bf16.astype(jnp.float32) * gates).astype(jnp.bfloat16)


def _reference_f32(x_bf16, w_f32, shift):
    """Full-precision weights reference (bounds bf16 weight error)."""
    xf = x_bf16.astype(jnp.float32)
    return xf * jax.nn.sigmoid(xf @ w_f32 + shift)


def _check(model, x_bf16, block_rows):
    out = model(x_bf16, block_rows=block_rows)
    out = jax.block_until_ready(out)
    B, D = x_bf16.shape
    assert out.shape == (B, D)
    assert out.dtype == jnp.bfloat16

    ref_bf16 = _reference_bf16(x_bf16, model.gating_weights,
                               model.gating_shift)
    err_bf16 = jnp.max(jnp.abs(out.astype(jnp.float32)
                               - ref_bf16.astype(jnp.float32)))
    assert float(err_bf16) < 2e-2, \
        f"mismatch vs bf16-operand reference (max abs err {float(err_bf16)})"

    ref_f32 = _reference_f32(x_bf16, model.gating_weights_f32,
                             model.gating_shift)
    err_f32 = jnp.max(jnp.abs(out.astype(jnp.float32) - ref_f32))
    assert float(err_f32) < 5e-2, \
        f"mismatch vs f32 reference (max abs err {float(err_f32)})"


if __name__ == "__main__":
    key = jax.random.PRNGKey(0)
    k_model, k_x1, k_x2 = jax.random.split(key, 3)

    feature_size = 64
    max_samples = 16
    cluster_size = 8
    output_dim = 128   # lane-aligned hidden size

    model = PoolingBaseModel(
        feature_size=feature_size,
        max_samples=max_samples,
        cluster_size=cluster_size,
        output_dim=output_dim,
        gating=True,
        add_batch_norm=True,
        is_training=False,
        key=k_model,
    )

    # Pooled activations (what LOUPE feeds into context gating): (B, output_dim).
    # block_rows=16 -> tm=16: multi-step, pipelined, "parallel" grid path.
    x_even = jax.random.normal(k_x1, (48, output_dim)).astype(jnp.bfloat16)
    _check(model, x_even, block_rows=16)

    # Ragged batch: B=40, tm=16 -> last tile is 8 rows (masked-store path).
    x_ragged = jax.random.normal(k_x2, (40, output_dim)).astype(jnp.bfloat16)
    _check(model, x_ragged, block_rows=16)

    print("KERNEL_OK")
</pallas_src>

<mosaic_0001>
module attributes {stable_mosaic.version = 11 : i64} {
  func.func @_context_gating_kernel(%arg0: i32, %arg1: memref<16x128xbf16, #tpu.memory_space<vmem>>, %arg2: memref<128x128xbf16, #tpu.memory_space<vmem>>, %arg3: memref<1x128xf32, #tpu.memory_space<vmem>>, %arg4: memref<16x128xbf16, #tpu.memory_space<vmem>>) attributes {dimension_semantics = [#tpu.dimension_semantics<parallel>], iteration_bounds = array<i64: 3>, scalar_prefetch = 0 : i64, scratch_operands = 0 : i64, tpu.core_type = #tpu.core_type<tc>, window_params = [{transform_indices = @transform_0, window_bounds = array<i64: 16, 128>}, {pipeline_mode = #tpu.pipeline_mode<synchronous>, transform_indices = @transform_1, window_bounds = array<i64: 128, 128>}, {pipeline_mode = #tpu.pipeline_mode<synchronous>, transform_indices = @transform_2, window_bounds = array<i64: 1, 128>}, {transform_indices = @transform_3, window_bounds = array<i64: 16, 128>}]} {
    %c0 = arith.constant 0 : index
    %c0_0 = arith.constant 0 : index
    %0 = vector.load %arg1[%c0, %c0_0] : memref<16x128xbf16, #tpu.memory_space<vmem>>, vector<16x128xbf16>
    %c0_1 = arith.constant 0 : index
    %c0_2 = arith.constant 0 : index
    %1 = vector.load %arg2[%c0_1, %c0_2] : memref<128x128xbf16, #tpu.memory_space<vmem>>, vector<128x128xbf16>
    %cst = arith.constant dense<0.000000e+00> : vector<16x128xf32>
    %2 = tpu.matmul %0, %1, %cst {dimension_numbers = #tpu.dot_dimension_numbers<[1], [0], [0], [1], [0, 0, 1, 1], [], []>} : vector<16x128xbf16>, vector<128x128xbf16>, vector<16x128xf32> -> vector<16x128xf32>
    %c0_3 = arith.constant 0 : index
    %c0_4 = arith.constant 0 : index
    %3 = vector.load %arg3[%c0_3, %c0_4] : memref<1x128xf32, #tpu.memory_space<vmem>>, vector<1x128xf32>
    %4 = vector.broadcast %3 : vector<1x128xf32> to vector<16x128xf32>
    %5 = arith.addf %2, %4 : vector<16x128xf32>
    %cst_5 = arith.constant 0.000000e+00 : f32
    %6 = vector.broadcast %cst_5 : f32 to vector<16x128xf32>
    %7 = arith.subf %6, %5 : vector<16x128xf32>
    %8 = math.exp %7 : vector<16x128xf32>
    %cst_6 = arith.constant 1.000000e+00 : f32
    %9 = vector.broadcast %cst_6 : f32 to vector<16x128xf32>
    %10 = arith.addf %9, %8 : vector<16x128xf32>
    %11 = tpu.reciprocal %10 {approx = true} : vector<16x128xf32> -> vector<16x128xf32>
    %12 = arith.extf %0 : vector<16x128xbf16> to vector<16x128xf32>
    %13 = arith.mulf %12, %11 : vector<16x128xf32>
    %14 = arith.truncf %13 : vector<16x128xf32> to vector<16x128xbf16>
    %c0_7 = arith.constant 0 : index
    %c0_8 = arith.constant 0 : index
    %15 = vector.load %arg4[%c0_7, %c0_8] : memref<16x128xbf16, #tpu.memory_space<vmem>>, vector<16x128xbf16>
    tpu.vector_store %arg4[%c0_7, %c0_8], %14 {strides = array<i32>} : memref<16x128xbf16, #tpu.memory_space<vmem>>, vector<16x128xbf16>,
    return
  }
  func.func @transform_0(%arg0: i32) -> (i32, i32) {
    %c0_i32 = arith.constant 0 : i32
    %c0_i32_0 = arith.constant 0 : i32
    return %arg0, %c0_i32 : i32, i32
  }
  func.func @transform_1(%arg0: i32) -> (i32, i32) {
    %c0_i32 = arith.constant 0 : i32
    %c0_i32_0 = arith.constant 0 : i32
    %c0_i32_1 = arith.constant 0 : i32
    return %c0_i32, %c0_i32_0 : i32, i32
  }
  func.func @transform_2(%arg0: i32) -> (i32, i32) {
    %c0_i32 = arith.constant 0 : i32
    %c0_i32_0 = arith.constant 0 : i32
    %c0_i32_1 = arith.constant 0 : i32
    return %c0_i32, %c0_i32_0 : i32, i32
  }
  func.func @transform_3(%arg0: i32) -> (i32, i32) {
    %c0_i32 = arith.constant 0 : i32
    %c0_i32_0 = arith.constant 0 : i32
    return %arg0, %c0_i32 : i32, i32
  }
}

</mosaic_0001>

<bundles_post_ra>
// kernel: tpu_custom_call.1
= control target key start
LH: loop header
LB: loop body
LE: loop exit
PB: predicated region body
PF: predicated region fallthrough
CT: control target
= control target key end

     0   :  { %8 = vsyncpa [#allocation3], 0  ;;  %s936_s0 = inlined_call_operand.hbm [shape: bf16[48,128], index: 0, kind: input, shape index: {}]   ;;  %s937_s1 = inlined_call_operand.hbm [shape: bf16[128,128], index: 1, kind: input, shape index: {}]   ;;  %s938_s2 = inlined_call_operand.vmem [shape: f32[1,128], index: 2, kind: input, shape index: {}]   ;;  %s939_s3 = inlined_call_operand.hbm [shape: bf16[48,128], index: 3, kind: output, shape index: {}]  }
   0x1   :  { %10 = vsyncpa [#allocation3 + $0x1], 0 }
   0x2   :  { %11 = vsyncpa [#allocation6], 0 }
   0x3   :  { %12 = vsyncpa [#allocation4], 0 }
   0x4   :  { %14 = vsyncpa [#allocation4 + $0x1], 0  ;;  %s748_s12 = smov 0   ;;  %s750_s13 = smov 0  }
   0x5   :  { %s752_s14 = smov 0   ;;  %s754_s15 = smov 0  }
   0x6 LB: > { %s769_s16 = sadd.s32 4294967295, %s717_s15   ;;  %s448_s17 = sadd.s32 4294967294, %s717_s15   ;;  %s717_s15 = sphi %s754_s15, %s960_s15   ;;  %s713_s14 = sphi %s752_s14, %s959_s14   ;;  %s709_s13 = sphi %s750_s13, %s958_s13   ;;  %s705_s12 = sphi %s748_s12, %s957_s12  }
   0x7   : > { %p40_p0 = scmp.ne.s32.totalorder %s709_s13, %s705_s12  ;;  %p940_p1 = scmp.eq.s32.totalorder %s769_s16, 0 }
   0x8   : > { %p112_p3 = scmp.eq.s32.totalorder %s448_s17, 2  ;;  %p449_p5 = scmp.ge.s32.totalorder %s717_s15, 1 }
   0x9   : > { %p778_p4 = por %p940_p1, %p40_p0  ;;  %p119_p7 = scmp.lt.s32.totalorder %s717_s15, 4 }
   0xa   : > { %p783_p6 = por %p112_p3, %p40_p0  ;;  %s719_s21 = smov [#allocation5]  }
   0xb   : > { %s944_s18 = scalar_select %p778_p4, 1, 0 }
   0xc   : > { %s945_s19 = scalar_select %p783_p6, 1, 0 }
   0xd   : > { %p788_p8 = pnand %p449_p5, %p119_p7  ;;  %s131_s22 = sshll.u32 %s719_s21, 4  ;;  %s132_s22 = int_to_ptr.vmem [resolvable:$true] %s131_s22 }
   0xe   : > { %s801_s24 = sadd.s32 1, %s717_s15   ;;  %s27_s25 = sadd.s32 1, %s713_s14 }
   0xf   : > { %s946_s20 = scalar_select %p788_p8, 1, 0 }
  0x10   : > { %p522_p9 = pneg %p788_p8  ;;  %s24_s26 = ssub.s32 %s717_s15, %s801_s24 }
  0x11   : > { %s606_s27 = scalar_lea.vmem %s132_s22, 1024  ;;  %p614_p3 = scmp.lt.s32.totalorder %s132_s22, %s132_s22 }
  0x12   : > { %p796_p10 = pnand %p522_p9, %p940_p1  ;;  %p607_p12 = scmp.ne.s32.totalorder %s132_s22, %s606_s27 }
  0x13   : > { %p615_p5 = scmp.lt.s32.totalorder %s606_s27, %s606_s27 }
  0x14   : > { %p597_p11 = pneg %p796_p10 }
  0x15   : > { %p616_p7 = por %p615_p5, %p614_p3 }
  0x16   : > { %p609_p13 = pnand %p607_p12, %p597_p11 }
  0x18   : > { %p610_p0 = pneg %p609_p13 }
  0x1a   : > { %p617_p2 = pnand %p616_p7, %p610_p0 }
  0x1c   : > { %620 = shalt.err (!%p617_p2)
}
  0x1d   : > { %s720_s28 = smov 64   ;;  %s721_s29 = smov 4  }
  0x1e   : > { %525 = dma.hbm_to_vmem [thread:$0]  (!%p796_p10), %s937_s1, 1024, %s132_s22, [#allocation6], %s720_s28, %s720_s28, %s721_s29  }
  0x1f   : > { %p25_p2 = scmp.eq.s32.totalorder %s24_s26, 0  ;;  %p34_p9 = scmp.ne.s32.totalorder %s713_s14, %s709_s13 }
  0x20   : > { %p35_p11 = scmp.eq.s32.totalorder %s717_s15, 0  ;;  %p535_p12 = scmp.lt.s32.totalorder %s717_s15, 3 }
  0x21   : > { %s821_s5 = scalar_select %p25_p2, %s713_s14, %s27_s25  }
  0x22   : > { %p36_p13 = por %p35_p11, %p34_p9  ;;  %p948_p0 = scmp.eq.s32.totalorder %s769_s16, 2 }
  0x23   : > { %s148_s7 = sand.u32 1, %s713_s14   ;;  %s476_s8 = sshll.u32 %s717_s15, 7 }
  0x24   : > { %p825_p3 = por %p948_p0, %p34_p9  ;;  %s452_s9 = sshll.u32 %s148_s7, 3 }
  0x25   : > { %s834_s17 = scalar_lea.hbm %s936_s0, %s476_s8  ;;  %s152_s21 = scalar_lea.vmem [#allocation2], %s452_s9 }
  0x26   : > { %s949_s6 = scalar_select %p825_p3, 1, 0 }
  0x27   : > { %s159_s22 = sshll.u32 %s152_s21, 4  ;;  %p836_p10 = pnand %p535_p12, %p36_p13  ;;  %s840_s22 = int_to_ptr.vmem [resolvable:$true] %s159_s22 }
  0x28   : > { %s842_s25 = scalar_lea.sflag [#allocation3], %s148_s7  ;;  %s621_s26 = scalar_lea.hbm %s834_s17, 128 }
  0x29   : > { %p622_p5 = scmp.ne.s32.totalorder %s834_s17, %s621_s26  ;;  %p623_p7 = pneg %p836_p10 }
  0x2a   : > { %s626_s4 = scalar_lea.hbm %s936_s0, 384  ;;  %p627_p11 = scmp.lt.s32.totalorder %s834_s17, %s936_s0 }
  0x2b   : > { %p624_p2 = pnand %p623_p7, %p622_p5  ;;  %p628_p12 = scmp.lt.s32.totalorder %s626_s4, %s621_s26 }
  0x2d   : > { %p625_p9 = pneg %p624_p2  ;;  %p629_p13 = por %p628_p12, %p627_p11 }
  0x2f   : > { %p630_p0 = pnand %p629_p13, %p625_p9 }
  0x31   : > { %633 = shalt.err (!%p630_p0)
}
  0x32   : > { %s634_s7 = scalar_lea.vmem %s840_s22, 128  ;;  %s722_s10 = smov [#allocation2]  }
  0x33   : > { %p635_p1 = scmp.ne.s32.totalorder %s840_s22, %s634_s7  ;;  %s639_s11 = sshll.u32 %s722_s10, 4  ;;  %s640_s11 = int_to_ptr.vmem [resolvable:$false] %s639_s11 }
  0x34   : > { %s641_s21 = scalar_lea.vmem %s640_s11, 256  ;;  %p642_p2 = scmp.lt.s32.totalorder %s840_s22, %s640_s11 }
  0x35   : > { %p637_p6 = pnand %p635_p1, %p623_p7  ;;  %p643_p3 = scmp.lt.s32.totalorder %s641_s21, %s634_s7 }
  0x37   : > { %p638_p5 = pneg %p637_p6  ;;  %p644_p4 = por %p643_p3, %p642_p2 }
  0x39   : > { %p645_p8 = pnand %p644_p4, %p638_p5 }
  0x3b   : > { %648 = shalt.err (!%p645_p8)
}
  0x3c   : > { %529 = dma.hbm_to_vmem [thread:$0]  (!%p836_p10), %s834_s17, 128, %s840_s22, %s842_s25, %s720_s28, %s720_s28, %s721_s29  }
  0x3d   : > { %p951_p1 = scmp.ne.s32.totalorder %s946_s20, 0 }
  0x3e   : > { %s869_s26 = sand.u32 (!%p951_p1), 1, %s709_s13   ;;  %p952_p4 = scmp.ne.s32.totalorder (!%p951_p1), %s944_s18, 0 }
  0x3f   : > { %171 = sbr.rel (%p951_p1) target bundleno = 356 (0x164), region = 32  ;;  %s456_s27 = sshll.u32 (!%p951_p1), %s869_s26, 3 }
  0x40   : > { %s174_s30 = scalar_lea.sflag (!%p951_p1), [#allocation3], %s869_s26  ;;  %s177_s23 = scalar_lea.vmem (!%p951_p1), [#allocation2], %s456_s27 }
  0x44   : > { %692 = dma.done.wait (%p952_p4), %s174_s30, 128  }
  0x45   : > { %694 = vsyncadd (%p952_p4), %s174_s30, 4294967168  ;;  %p953_p6 = scmp.eq.s32.totalorder %s769_s16, 0 }
  0x47   : > { %696 = dma.done.wait (%p953_p6), [#allocation6], 1024   ;;  %p954_p8 = pmov %p953_p6 }
  0x48   : > { %v723_v0 = vmov 0.0   ;;  %vm724_vm0 = vmmov 0   ;;  %v577_v1 = vld [vmem:[#allocation5 + $0x38] sm:$0xff]   ;;  %v578_v2 = vld [vmem:[#allocation5 + $0x30] sm:$0xff]   ;;  %v579_v3 = vld [vmem:[#allocation5 + $0x28] sm:$0xff]   ;;  %s479_s28 = sshll.u32 %s769_s16, 7 }
  0x49   : > { %698 = vsyncadd (%p954_p8), [#allocation6], 4294966272  ;;  %494 = vmatprep.subr.bf16.mxu0 %v723_v0  ;;  %510 = vmatprep.mubr.msk.bf16.mxu0 %vm724_vm0, %v723_v0  ;;  %v580_v4 = vld [vmem:[#allocation5 + $0x20] sm:$0xff]   ;;  %v581_v5 = vld [vmem:[#allocation5 + $0x18] sm:$0xff]   ;;  %s203_s29 = scalar_lea.vmem [#allocation7], %s456_s27  ;;  %s892_s4 = scalar_lea.hbm %s939_s3, %s479_s28 }
  0x4a   : > { %495 = vmatpush3.bf16.msra.mxu0 %v577_v1  ;;  %v582_v6 = vld [vmem:[#allocation5 + $0x10] sm:$0xff]   ;;  %v583_v7 = vld [vmem:[#allocation5 + $0x8] sm:$0xff]   ;;  %v584_v8 = vld [vmem:[#allocation5] sm:$0xff]   ;;  %s365_s17 = sshll.u32 %s203_s29, 4  ;;  %s352_s8 = scalar_lea.sflag [#allocation4], %s869_s26  ;;  %s894_s17 = int_to_ptr.vmem [resolvable:$true] %s365_s17 }
  0x4b   : > { %496 = vmatprep.subr.bf16.mxu0 %v723_v0  ;;  %v207_v9 = vld [vmem:[%s177_s23] sm:$0xff]   ;;  %s649_s16 = scalar_lea.vmem %s894_s17, 128  ;;  %p955_p10 = scmp.ne.s32.totalorder %s949_s6, 0 }
  0x4c   : > { %v459_v10 = vld [vmem:[%s938_s2] ss:$0 sm:$0xff]  ;;  %v337_v25 = vunpack.c.l.bf16 %v207_v9  ;;  %v338_v26 = vunpack.c.h.bf16 %v207_v9  ;;  %p650_p3 = scmp.ne.s32.totalorder %s894_s17, %s649_s16  ;;  %s725_s9 = smov [#allocation7]  }
  0x4d   : > { %s653_s7 = sshll.u32 %s725_s9, 4  ;;  %s654_s7 = int_to_ptr.vmem [resolvable:$false] %s653_s7 }
  0x4e   : > { %497 = vmatpush3.bf16.msra.mxu0 %v578_v2  ;;  %p651_p7 = pnand %p650_p3, %p955_p10  ;;  %s655_s10 = scalar_lea.vmem %s654_s7, 256 }
  0x4f   : > { %498 = vmatprep.subr.bf16.mxu0 %v723_v0  ;;  %p656_p11 = scmp.lt.s32.totalorder %s894_s17, %s654_s7  ;;  %p657_p12 = scmp.lt.s32.totalorder %s655_s10, %s649_s16 }
  0x50   : > { %p652_p9 = pneg %p651_p7 }
  0x51   : > { %p658_p13 = por %p657_p12, %p656_p11 }
  0x52   : > { %499 = vmatpush3.bf16.msra.mxu0 %v579_v3 }
  0x53   : > { %500 = vmatprep.subr.bf16.mxu0 %v723_v0  ;;  %p659_p0 = pnand %p658_p13, %p652_p9 }
  0x56   : > { %501 = vmatpush3.bf16.msra.mxu0 %v580_v4 }
  0x57   : > { %502 = vmatprep.subr.bf16.mxu0 %v723_v0 }
  0x5a   : > { %503 = vmatpush3.bf16.msra.mxu0 %v581_v5 }
  0x5b   : > { %504 = vmatprep.subr.bf16.mxu0 %v723_v0 }
  0x5e   : > { %505 = vmatpush3.bf16.msra.mxu0 %v582_v6 }
  0x5f   : > { %506 = vmatprep.subr.bf16.mxu0 %v723_v0 }
  0x62   : > { %507 = vmatpush3.bf16.msra.mxu0 %v583_v7 }
  0x63   : > { %508 = vmatprep.subr.bf16.mxu0 %v723_v0 }
  0x66   : > { %509 = vmatpush3.bf16.msra.mxu0 %v584_v8 }
  0x69   : > { %511 = vmatmul.mubr.bf16.vlgmr.msra.gmra.mxu0 %v207_v9 }
 0x129   : > { %v320_v11 = vpop.f32.mrf.mxu0 }
 0x12a   : > { %v321_v12 = vadd.f32 %v459_v10, %v320_v11 }
 0x12b   : > { %v512_v13 = vpop.f32.mrf.mxu0 }
 0x12c   : > { %v327_v14 = vsub.f32 0.0, %v321_v12 }
 0x12d   : > { %v323_v15 = vpop.f32.mrf.mxu0 }
 0x12e   : > { %v329_v16 = vmul.f32 1.442695, %v327_v14  ;;  %v324_v17 = vadd.f32 %v459_v10, %v323_v15 }
 0x12f   : > { %v513_v18 = vpop.f32.mrf.mxu0 }
 0x130   : > { %587 = vpow2.f32 %v329_v16  ;;  %v328_v19 = vsub.f32 0.0, %v324_v17 }
 0x132   : > { %v331_v20 = vmul.f32 1.442695, %v328_v19 }
 0x134   : > { %589 = vpow2.f32 %v331_v20 }
 0x13d   : > { %v588_v21 = vpop.eup %587 }
 0x13e   : > { %v333_v22 = vadd.f32 1.0, %v588_v21 }
 0x140   : > { %591 = vrcp.f32 %v333_v22 }
 0x141   : > { %v590_v23 = vpop.eup %589 }
 0x142   : > { %v334_v24 = vadd.f32 1.0, %v590_v23 }
 0x144   : > { %593 = vrcp.f32 %v334_v24 }
 0x14d   : > { %v592_v27 = vpop.eup %591 }
 0x14e   : > { %v339_v29 = vmul.f32 %v592_v27, %v337_v25 }
 0x151   : > { %v594_v28 = vpop.eup %593 }
 0x152   : > { %v340_v30 = vmul.f32 %v594_v28, %v338_v26 }
 0x154   : > { %v483_v31 = vpack.c.bf16 %v340_v30, %v339_v29 }
 0x156   : > { %484 = vst [vmem:[%s203_s29] sm:$0xff] %v483_v31  }
 0x157   : > { %662 = shalt.err (!%p659_p0)
}
 0x158   : > { %s663_s11 = scalar_lea.hbm %s892_s4, 128  ;;  %s667_s30 = scalar_lea.hbm %s939_s3, 384 }
 0x159   : > { %p664_p5 = scmp.ne.s32.totalorder %s892_s4, %s663_s11  ;;  %p668_p4 = scmp.lt.s32.totalorder %s892_s4, %s939_s3 }
 0x15a   : > { %p669_p6 = scmp.lt.s32.totalorder %s667_s30, %s663_s11 }
 0x15b   : > { %p665_p2 = pnand %p664_p5, %p955_p10 }
 0x15c   : > { %p670_p8 = por %p669_p6, %p668_p4 }
 0x15d   : > { %p666_p1 = pneg %p665_p2 }
 0x15f   : > { %p671_p3 = pnand %p670_p8, %p666_p1 }
 0x161   : > { %674 = shalt.err (!%p671_p3)
}
 0x162   : > { %s726_s20 = smov 64   ;;  %s727_s28 = smov 4  }
 0x163   : > { %520 = dma.vmem_to_hbm [thread:$0]  (%p955_p10), %s894_s17, 128, %s892_s4, %s352_s8, %s726_s20, %s726_s20, %s727_s28  }
 0x164 PF: > { %p537_p7 = scmp.ge.s32.totalorder %s717_s15, 2  ;;  %s380_s29 = sand.u32 1, %s705_s12  }
 0x165   : > { %p956_p9 = scmp.ne.s32.totalorder %s945_s19, 0  ;;  %s381_s22 = scalar_lea.sflag [#allocation4], %s380_s29 }
 0x167   : > { %p531_p11 = pnand %p537_p7, %p956_p9 }
 0x169   : > { %p532_p12 = pneg %p531_p11 }
 0x16b   : > { %700 = dma.done.wait (%p532_p12), %s381_s22, 128  }
 0x16c   : > { %702 = vsyncadd (%p532_p12), %s381_s22, 4294967168  ;;  %p17_p13 = scmp.ge.s32.totalorder %s801_s24, 5   ;;  %s957_s12 = smov %s709_s13 }
 0x16d   : > { %s958_s13 = smov %s713_s14  ;;  %s959_s14 = smov %s821_s5 }
 0x16e   : > { %s960_s15 = smov %s801_s24  ;;  %19 = sbr.rel (!%p17_p13) target bundleno = 6 (0x6), region = 81 }
 0x173   :  { %386 = vsyncpa [#allocation3], 1 }
 0x174   :  { %388 = vsyncpa [#allocation3 + $0x1], 1 }
 0x175   :  { %389 = vsyncpa [#allocation6], 1 }
 0x176   :  { %390 = vsyncpa [#allocation4], 1 }
 0x177   :  { %392 = vsyncpa [#allocation4 + $0x1], 1 }

</bundles_post_ra>
